<compile_context>
chip_gen: v7x
topology: tpu7x:2x2x1
jax: 0.10.0
libtpu: 0.0.40
codegen_flags: <defaults>
</compile_context>

<pallas_src>
import jax
import jax.numpy as jnp
from jax.experimental import pallas as pl
from jax.experimental.pallas import tpu as pltpu


def _drop_path_kernel(scale_ref, x_ref, o_ref):
    """o = x * scale (per-row broadcast).

    scale_ref : (N, 1)  VMEM f32, 0.0 (dropped) or 1/keep_prob (kept)
    x_ref     : (N, TM) VMEM, lane-dense tile of the flattened input
    o_ref     : (N, TM) VMEM
    """
    o_ref[...] = (x_ref[...].astype(jnp.float32) * scale_ref[...]).astype(o_ref.dtype)


def drop_path(x, drop_prob: float = 0.0, training: bool = False, seed: int = 0):
    """Pallas DropPath with the same forward semantics as the PyTorch module."""
    if drop_prob == 0.0 or not training:
        return x                                    # PyTorch short-circuit
    keep_prob = 1.0 - drop_prob
    if not 0.0 < keep_prob <= 1.0:
        raise ValueError(f"invalid drop_prob {drop_prob}")

    n = int(x.shape[0])
    m = 1
    for d in x.shape[1:]:
        m *= int(d)

    # Per-sample keep mask, exactly the PyTorch recipe:
    #   random_tensor = floor(keep_prob + U[0,1))  in {0, 1}
    #   out           = (x / keep_prob) * random_tensor
    key = jax.random.PRNGKey(seed)
    rand = jax.random.uniform(key, (n, 1), dtype=jnp.float32)
    random_tensor = jnp.floor(keep_prob + rand)                   # (n, 1) in {0,1}
    scale = (random_tensor / jnp.float32(keep_prob)).astype(jnp.float32)

    # Lane-dense flatten + pad so every store is an unmasked full-lane vst.
    x2 = x.reshape(n, m)
    m128 = ((m + 127) // 128) * 128
    tm = min(m128, 2048)                     # big lane tile, amortize grid overhead
    m_pad = ((m128 + tm - 1) // tm) * tm
    if m_pad != m:
        x2 = jnp.pad(x2, ((0, 0), (0, m_pad - m)))

    grid = (m_pad // tm,)
    out2 = pl.pallas_call(
        _drop_path_kernel,
        out_shape=jax.ShapeDtypeStruct((n, m_pad), x.dtype),
        grid=grid,
        in_specs=[
            pl.BlockSpec((n, 1), lambda j: (0, 0)),    # scale: same tiny block every step
            pl.BlockSpec((n, tm), lambda j: (0, j)),   # x tile
        ],
        out_specs=pl.BlockSpec((n, tm), lambda j: (0, j)),
        compiler_params=pltpu.CompilerParams(
            dimension_semantics=("parallel",)),
    )(scale, x2)

    if m_pad != m:
        out2 = out2[:, :m]
    return out2.reshape(x.shape)


if __name__ == "__main__":
    key = jax.random.PRNGKey(0)
    N, C, H, W = 2, 4, 16, 16
    x = jax.random.normal(key, (N, C, H, W), jnp.float32)

    # --- eval mode / drop_prob == 0: exact identity -------------------------
    out_eval = drop_path(x, drop_prob=0.25, training=False)
    out_p0 = drop_path(x, drop_prob=0.0, training=True)
    out_eval, out_p0 = jax.block_until_ready((out_eval, out_p0))
    assert jnp.array_equal(out_eval, x)
    assert jnp.array_equal(out_p0, x)

    # --- training mode: each sample is either zeroed or scaled by 1/keep ----
    def check_training(x_in, drop_prob, seed):
        keep_prob = 1.0 - drop_prob
        out = jax.block_until_ready(
            drop_path(x_in, drop_prob=drop_prob, training=True, seed=seed))
        assert out.shape == x_in.shape and out.dtype == x_in.dtype
        for i in range(x_in.shape[0]):
            dropped = bool(jnp.max(jnp.abs(out[i])) == 0.0)
            kept = bool(jnp.allclose(out[i], x_in[i] / keep_prob,
                                     atol=1e-5, rtol=1e-5))
            assert dropped or kept, f"sample {i}: invalid DropPath output"

    check_training(x, drop_prob=0.25, seed=42)

    # Larger batch / multi-tile lane axis still works.
    x_big = jax.random.normal(jax.random.PRNGKey(1), (16, C, H, W), jnp.float32)
    check_training(x_big, drop_prob=0.5, seed=7)

    # Determinism: same seed -> same mask.
    a = drop_path(x_big, drop_prob=0.5, training=True, seed=7)
    b = drop_path(x_big, drop_prob=0.5, training=True, seed=7)
    a, b = jax.block_until_ready((a, b))
    assert jnp.array_equal(a, b)

    print("KERNEL_OK")
</pallas_src>

<mosaic_0001>
module attributes {stable_mosaic.version = 11 : i64} {
  func.func @_drop_path_kernel(%arg0: i32, %arg1: memref<2x1xf32, #tpu.memory_space<vmem>>, %arg2: memref<2x1024xf32, #tpu.memory_space<vmem>>, %arg3: memref<2x1024xf32, #tpu.memory_space<vmem>>) attributes {dimension_semantics = [#tpu.dimension_semantics<parallel>], iteration_bounds = array<i64: 1>, scalar_prefetch = 0 : i64, scratch_operands = 0 : i64, tpu.core_type = #tpu.core_type<tc>, window_params = [{pipeline_mode = #tpu.pipeline_mode<synchronous>, transform_indices = @transform_0, window_bounds = array<i64: 2, 1>}, {transform_indices = @transform_1, window_bounds = array<i64: 2, 1024>}, {transform_indices = @transform_2, window_bounds = array<i64: 2, 1024>}]} {
    %c0 = arith.constant 0 : index
    %c0_0 = arith.constant 0 : index
    %0 = vector.load %arg2[%c0, %c0_0] : memref<2x1024xf32, #tpu.memory_space<vmem>>, vector<2x1024xf32>
    %c0_1 = arith.constant 0 : index
    %c0_2 = arith.constant 0 : index
    %1 = vector.load %arg1[%c0_1, %c0_2] : memref<2x1xf32, #tpu.memory_space<vmem>>, vector<2x1xf32>
    %2 = vector.broadcast %1 : vector<2x1xf32> to vector<2x1024xf32>
    %3 = arith.mulf %0, %2 : vector<2x1024xf32>
    %c0_3 = arith.constant 0 : index
    %c0_4 = arith.constant 0 : index
    %4 = vector.load %arg3[%c0_3, %c0_4] : memref<2x1024xf32, #tpu.memory_space<vmem>>, vector<2x1024xf32>
    tpu.vector_store %arg3[%c0_3, %c0_4], %3 {strides = array<i32>} : memref<2x1024xf32, #tpu.memory_space<vmem>>, vector<2x1024xf32>,
    return
  }
  func.func @transform_0(%arg0: i32) -> (i32, i32) {
    %c0_i32 = arith.constant 0 : i32
    %c0_i32_0 = arith.constant 0 : i32
    %c0_i32_1 = arith.constant 0 : i32
    return %c0_i32, %c0_i32_0 : i32, i32
  }
  func.func @transform_1(%arg0: i32) -> (i32, i32) {
    %c0_i32 = arith.constant 0 : i32
    %c0_i32_0 = arith.constant 0 : i32
    return %c0_i32, %arg0 : i32, i32
  }
  func.func @transform_2(%arg0: i32) -> (i32, i32) {
    %c0_i32 = arith.constant 0 : i32
    %c0_i32_0 = arith.constant 0 : i32
    return %c0_i32, %arg0 : i32, i32
  }
}

</mosaic_0001>

<bundles_post_ra>
// kernel: tpu_custom_call.1
= control target key start
LH: loop header
LB: loop body
LE: loop exit
PB: predicated region body
PF: predicated region fallthrough
CT: control target
= control target key end

     0   :  { %7 = vsyncpa [#allocation3], 0  ;;  %s157_s0 = inlined_call_operand.vmem [shape: f32[2,1], index: 0, kind: input, shape index: {}]   ;;  %s158_s1 = inlined_call_operand.hbm [shape: f32[2,1024], index: 1, kind: input, shape index: {}]   ;;  %s159_s2 = inlined_call_operand.hbm [shape: f32[2,1024], index: 2, kind: output, shape index: {}]  }
   0x1   :  { %8 = vsyncpa [#allocation4], 0  ;;  %s111_s9 = smov [#allocation2]   ;;  %s63_s13 = scalar_lea.hbm %s158_s1, 256 }
   0x2   :  { %s17_s10 = sshll.u32 %s111_s9, 4  ;;  %p64_p0 = scmp.ne.s32.totalorder %s158_s1, %s63_s13  ;;  %s18_s10 = int_to_ptr.vmem [resolvable:$true] %s17_s10 }
   0x3   :  { %p67_p1 = scmp.lt.u32.totalorder %s63_s13, %s158_s1 }
   0x5   :  { %p69_p2 = pnand %p67_p1, %p64_p0 }
   0x7   :  { %72 = shalt.err (!%p69_p2)
}
   0x8   :  { %s73_s18 = scalar_lea.vmem %s18_s10, 256  ;;  %p78_p4 = scmp.lt.s32.totalorder %s18_s10, %s18_s10 }
   0x9   :  { %p74_p3 = scmp.ne.s32.totalorder %s18_s10, %s73_s18  ;;  %p79_p5 = scmp.lt.s32.totalorder %s73_s18, %s73_s18 }
   0xb   :  { %p80_p6 = por %p79_p5, %p78_p4 }
   0xd   :  { %p81_p7 = pnand %p80_p6, %p74_p3 }
   0xf   :  { %84 = shalt.err (!%p81_p7)
}
  0x10   :  { %20 = dma.hbm_to_vmem [thread:$0]  %s158_s1, 256, %s18_s10, [#allocation3]  }
  0x11   :  { %107 = dma.done.wait [#allocation3], 256  }
  0x12   :  { %108 = vsyncadd [#allocation3], 4294967040  ;;  %v112_v0 = vmov 0   ;;  %v26_v1 = vld [vmem:[%s157_s0] sm:$0x3]  ;;  %v34_v4 = vlaneseq  ;;  %v25_v10 = vld [vmem:[#allocation2 + $0x8] sm:$0xff] }
  0x13   :  { %62 = vset.pattern.permute.xlu0 %v112_v0  ;;  %v113_v2 = vmov 269488144   ;;  %v24_v9 = vld [vmem:[#allocation2] sm:$0xff]  ;;  %s114_s23 = smov [#allocation5]  }
  0x14   :  { %29 = vperm.xlu0 %62, %v26_v1   ;;  %v32_v3 = vunpack.c.l.s4 %v113_v2  ;;  %v35_v6 = vshrl.u32 %v34_v4, 7  ;;  %s49_s1 = sshll.u32 %s114_s23, 4  ;;  %s50_s1 = int_to_ptr.vmem [resolvable:$true] %s49_s1 }
  0x15   :  { %s85_s24 = scalar_lea.vmem %s50_s1, 256  ;;  %p90_p9 = scmp.lt.s32.totalorder %s50_s1, %s50_s1 }
  0x16   :  { %v33_v5 = vunpack.c.0.s8 %v32_v3  ;;  %p86_p8 = scmp.ne.s32.totalorder %s50_s1, %s85_s24  ;;  %p91_p10 = scmp.lt.s32.totalorder %s85_s24, %s85_s24 }
  0x18   :  { %v36_v7 = vsub.s32 %v33_v5, %v35_v6  ;;  %p92_p11 = por %p91_p10, %p90_p9 }
  0x1a   :  { %p93_p12 = pnand %p92_p11, %p86_p8 }
  0x93   :  { %v30_v8 = vpop.permute.xlu0 %29 }
  0x94   :  { %v37_v11 = vrot.slane %v30_v8, %v36_v7 }
  0x96   :  { %v39_v12 = vmul.f32 %v37_v11, %v24_v9  ;;  %v40_v13 = vmul.f32 %v37_v11, %v25_v10 }
  0x98   :  { %41 = vst [vmem:[#allocation5] sm:$0xff] %v39_v12  ;;  %42 = vst [vmem:[#allocation5 + $0x8] sm:$0xff] %v40_v13 }
  0x99   :  { %96 = shalt.err (!%p93_p12)
}
  0x9a   :  { %s97_s26 = scalar_lea.hbm %s159_s2, 256 }
  0x9b   :  { %p98_p13 = scmp.ne.s32.totalorder %s159_s2, %s97_s26  ;;  %p101_p0 = scmp.lt.u32.totalorder %s97_s26, %s159_s2 }
  0x9d   :  { %p103_p1 = pnand %p101_p0, %p98_p13 }
  0x9f   :  { %106 = shalt.err (!%p103_p1)
}
  0xa0   :  { %52 = dma.vmem_to_hbm [thread:$0]  %s50_s1, 256, %s159_s2, [#allocation4]  }
  0xa1   :  { %109 = dma.done.wait [#allocation4], 256  }
  0xa2   :  { %110 = vsyncadd [#allocation4], 4294967040 }
  0xa3   :  { %56 = vsyncpa [#allocation3], 1 }
  0xa4   :  { %57 = vsyncpa [#allocation4], 1 }

</bundles_post_ra>
